<compile_context>
chip_gen: v7x
topology: tpu7x:2x2x1
jax: 0.10.0
libtpu: 0.0.40
codegen_flags: <defaults>
</compile_context>

<pallas_src>
import functools

import jax
import jax.numpy as jnp
from jax import lax
from jax.experimental import pallas as pl
from jax.experimental.pallas import tpu as pltpu


def _round_up(x: int, m: int) -> int:
    return (x + m - 1) // m * m


def _js_divergence_kernel(p_ref, q_ref, o_ref, *, eps, n_rows, block_rows,
                          needs_mask):
    """One (block_rows, D) tile of the Jensen-Shannon reduction.

    p_ref, q_ref: (TM, D) VMEM tiles of the flattened probability tensors.
    o_ref:        (1, 1) f32 accumulator, resident across the whole grid.
    """
    i = pl.program_id(0)

    @pl.when(i == 0)
    def _init():
        o_ref[...] = jnp.zeros_like(o_ref)

    # f32 math for the logs (accuracy; v5e has no bf16 EUP/VALU anyway).
    p = p_ref[...].astype(jnp.float32)
    q = q_ref[...].astype(jnp.float32)

    # m = log(0.5*(p+q)).clamp(min=eps)   — exact torch semantics.
    m = jnp.maximum(jnp.log(0.5 * (p + q)), eps)

    # 0.5 * [ p*(log p - m) + q*(log q - m) ]  (the /N "batchmean" is folded
    # into the epilogue below).
    val = 0.5 * (p * (jnp.log(p) - m) + q * (jnp.log(q) - m))

    if needs_mask:
        # Zero out padded rows (only emitted when N % TM != 0).
        row = i * block_rows + lax.broadcasted_iota(jnp.int32, val.shape, 0)
        val = jnp.where(row < n_rows, val, 0.0)

    o_ref[...] += jnp.sum(val, keepdims=True)

    @pl.when(i == pl.num_programs(0) - 1)
    def _finalize():
        o_ref[...] = o_ref[...] * (1.0 / n_rows)   # batchmean


def js_divergence(p, q, *, eps=1e-7, block_rows=256):
    """JAX/Pallas equivalent of Divergence(beta_)(p, q). Returns a scalar."""
    d = p.shape[-1]
    p2 = p.reshape(-1, d)
    q2 = q.reshape(-1, q.shape[-1])
    assert p2.shape == q2.shape, "p and q must flatten to the same (N, D)"
    n_rows = p2.shape[0]

    # Row tile: multiple of 8 sublanes, capped at block_rows; full D per block
    # (lane-dense last dim).
    tm = min(int(block_rows), _round_up(n_rows, 8))
    tm = _round_up(tm, 8)
    padded_rows = _round_up(n_rows, tm)
    needs_mask = padded_rows != n_rows
    if needs_mask:
        pad = padded_rows - n_rows
        # Pad with 1.0 (harmless values); padded rows are masked in-kernel.
        p2 = jnp.pad(p2, ((0, pad), (0, 0)), constant_values=1.0)
        q2 = jnp.pad(q2, ((0, pad), (0, 0)), constant_values=1.0)

    grid = (padded_rows // tm,)

    kernel = functools.partial(
        _js_divergence_kernel,
        eps=float(eps),
        n_rows=int(n_rows),
        block_rows=int(tm),
        needs_mask=bool(needs_mask),
    )

    out = pl.pallas_call(
        kernel,
        out_shape=jax.ShapeDtypeStruct((1, 1), jnp.float32),
        grid_spec=pltpu.PrefetchScalarGridSpec(
            num_scalar_prefetch=0,
            grid=grid,
            in_specs=[
                pl.BlockSpec((tm, d), lambda i: (i, 0)),
                pl.BlockSpec((tm, d), lambda i: (i, 0)),
            ],
            out_specs=pl.BlockSpec((1, 1), lambda i: (0, 0)),
        ),
        compiler_params=pltpu.CompilerParams(
            dimension_semantics=("arbitrary",),   # reduction axis
        ),
    )(p2, q2)
    return out[0, 0]


class Divergence:
    """Forward-only port of the PyTorch Divergence module."""

    def __init__(self, beta_):
        self.beta_ = beta_   # stored for parity; unused in forward (as in torch)
        self.eps = 1e-7

    def __call__(self, p, q):
        return js_divergence(p, q, eps=self.eps)


def _reference(p, q, eps=1e-7):
    """Pure-JAX reference mirroring the PyTorch module exactly."""
    d = p.shape[-1]
    p2 = p.reshape(-1, d).astype(jnp.float32)
    q2 = q.reshape(-1, d).astype(jnp.float32)
    n = p2.shape[0]
    m = jnp.maximum(jnp.log(0.5 * (p2 + q2)), eps)
    kl_pm = jnp.sum(p2 * (jnp.log(p2) - m)) / n
    kl_qm = jnp.sum(q2 * (jnp.log(q2) - m)) / n
    return 0.5 * (kl_pm + kl_qm)


if __name__ == "__main__":
    key = jax.random.PRNGKey(0)
    k1, k2 = jax.random.split(key)

    # RankCSE calls Divergence on softmax-ed similarity lists: (batch, batch)
    # rows of probabilities.  Small demo shape: batch=8, list length=32.
    B, D = 8, 32
    beta_ = 1.0

    p = jax.nn.softmax(jax.random.normal(k1, (B, D), dtype=jnp.float32), axis=-1)
    q = jax.nn.softmax(jax.random.normal(k2, (B, D), dtype=jnp.float32), axis=-1)

    div = Divergence(beta_)
    out = div(p, q)
    out = jax.block_until_ready(out)

    ref = _reference(p, q)
    assert out.shape == (), out.shape
    assert jnp.allclose(out, ref, atol=1e-5, rtol=1e-5), (out, ref)

    print("KERNEL_OK")
</pallas_src>

<mosaic_0001>
module attributes {stable_mosaic.version = 11 : i64} {
  func.func @_js_divergence_kernel(%arg0: i32, %arg1: memref<8x32xf32, #tpu.memory_space<vmem>>, %arg2: memref<8x32xf32, #tpu.memory_space<vmem>>, %arg3: memref<1x1xf32, #tpu.memory_space<vmem>>) attributes {dimension_semantics = [#tpu.dimension_semantics<arbitrary>], iteration_bounds = array<i64: 1>, scalar_prefetch = 0 : i64, scratch_operands = 0 : i64, tpu.core_type = #tpu.core_type<tc>, window_params = [{transform_indices = @transform_0, window_bounds = array<i64: 8, 32>}, {transform_indices = @transform_1, window_bounds = array<i64: 8, 32>}, {pipeline_mode = #tpu.pipeline_mode<synchronous>, transform_indices = @transform_2, window_bounds = array<i64: 1, 1>}]} {
    %c0_i32 = arith.constant 0 : i32
    %0 = arith.cmpi eq, %arg0, %c0_i32 : i32
    %1 = arith.extui %0 : i1 to i32
    %c0_i32_0 = arith.constant 0 : i32
    %2 = arith.cmpi ne, %1, %c0_i32_0 : i32
    scf.if %2 {
      %cst_13 = arith.constant 0.000000e+00 : f32
      %31 = vector.broadcast %cst_13 : f32 to vector<1x1xf32>
      %c0_14 = arith.constant 0 : index
      %c0_15 = arith.constant 0 : index
      %32 = vector.load %arg3[%c0_14, %c0_15] : memref<1x1xf32, #tpu.memory_space<vmem>>, vector<1x1xf32>
      tpu.vector_store %arg3[%c0_14, %c0_15], %31 {strides = array<i32>} : memref<1x1xf32, #tpu.memory_space<vmem>>, vector<1x1xf32>,
    } else {
    }
    %c0 = arith.constant 0 : index
    %c0_1 = arith.constant 0 : index
    %3 = vector.load %arg1[%c0, %c0_1] : memref<8x32xf32, #tpu.memory_space<vmem>>, vector<8x32xf32>
    %c0_2 = arith.constant 0 : index
    %c0_3 = arith.constant 0 : index
    %4 = vector.load %arg2[%c0_2, %c0_3] : memref<8x32xf32, #tpu.memory_space<vmem>>, vector<8x32xf32>
    %5 = arith.addf %3, %4 : vector<8x32xf32>
    %cst = arith.constant 5.000000e-01 : f32
    %6 = vector.broadcast %cst : f32 to vector<8x32xf32>
    %7 = arith.mulf %6, %5 : vector<8x32xf32>
    %8 = math.log %7 : vector<8x32xf32>
    %cst_4 = arith.constant 1.000000e-07 : f32
    %9 = vector.broadcast %cst_4 : f32 to vector<8x32xf32>
    %10 = arith.maximumf %8, %9 : vector<8x32xf32>
    %11 = math.log %3 : vector<8x32xf32>
    %12 = arith.subf %11, %10 : vector<8x32xf32>
    %13 = arith.mulf %3, %12 : vector<8x32xf32>
    %14 = math.log %4 : vector<8x32xf32>
    %15 = arith.subf %14, %10 : vector<8x32xf32>
    %16 = arith.mulf %4, %15 : vector<8x32xf32>
    %17 = arith.addf %13, %16 : vector<8x32xf32>
    %cst_5 = arith.constant 5.000000e-01 : f32
    %18 = vector.broadcast %cst_5 : f32 to vector<8x32xf32>
    %19 = arith.mulf %18, %17 : vector<8x32xf32>
    %c0_6 = arith.constant 0 : index
    %c0_7 = arith.constant 0 : index
    %20 = vector.load %arg3[%c0_6, %c0_7] : memref<1x1xf32, #tpu.memory_space<vmem>>, vector<1x1xf32>
    %21 = vector.shape_cast %19 : vector<8x32xf32> to vector<1x8x32xf32>
    %cst_8 = arith.constant dense<0.000000e+00> : vector<1xf32>
    %22 = vector.multi_reduction <add>, %21, %cst_8 [1, 2] : vector<1x8x32xf32> to vector<1xf32>
    %23 = vector.shape_cast %22 : vector<1xf32> to vector<1x1x1xf32>
    %24 = vector.extract %23[0, 0, 0] : f32 from vector<1x1x1xf32>
    %25 = vector.broadcast %24 : f32 to vector<1x1xf32>
    %26 = arith.addf %20, %25 : vector<1x1xf32>
    %c0_9 = arith.constant 0 : index
    %c0_10 = arith.constant 0 : index
    %27 = vector.load %arg3[%c0_9, %c0_10] : memref<1x1xf32, #tpu.memory_space<vmem>>, vector<1x1xf32>
    tpu.vector_store %arg3[%c0_9, %c0_10], %26 {strides = array<i32>} : memref<1x1xf32, #tpu.memory_space<vmem>>, vector<1x1xf32>,
    %c0_i32_11 = arith.constant 0 : i32
    %28 = arith.cmpi eq, %arg0, %c0_i32_11 : i32
    %29 = arith.extui %28 : i1 to i32
    %c0_i32_12 = arith.constant 0 : i32
    %30 = arith.cmpi ne, %29, %c0_i32_12 : i32
    scf.if %30 {
      %c0_13 = arith.constant 0 : index
      %c0_14 = arith.constant 0 : index
      %31 = vector.load %arg3[%c0_13, %c0_14] : memref<1x1xf32, #tpu.memory_space<vmem>>, vector<1x1xf32>
      %cst_15 = arith.constant 1.250000e-01 : f32
      %32 = vector.broadcast %cst_15 : f32 to vector<1x1xf32>
      %33 = arith.mulf %31, %32 : vector<1x1xf32>
      %c0_16 = arith.constant 0 : index
      %c0_17 = arith.constant 0 : index
      %34 = vector.load %arg3[%c0_16, %c0_17] : memref<1x1xf32, #tpu.memory_space<vmem>>, vector<1x1xf32>
      tpu.vector_store %arg3[%c0_16, %c0_17], %33 {strides = array<i32>} : memref<1x1xf32, #tpu.memory_space<vmem>>, vector<1x1xf32>,
    } else {
    }
    return
  }
  func.func @transform_0(%arg0: i32) -> (i32, i32) {
    %c0_i32 = arith.constant 0 : i32
    %c0_i32_0 = arith.constant 0 : i32
    return %arg0, %c0_i32 : i32, i32
  }
  func.func @transform_1(%arg0: i32) -> (i32, i32) {
    %c0_i32 = arith.constant 0 : i32
    %c0_i32_0 = arith.constant 0 : i32
    return %arg0, %c0_i32 : i32, i32
  }
  func.func @transform_2(%arg0: i32) -> (i32, i32) {
    %c0_i32 = arith.constant 0 : i32
    %c0_i32_0 = arith.constant 0 : i32
    %c0_i32_1 = arith.constant 0 : i32
    return %c0_i32, %c0_i32_0 : i32, i32
  }
}

</mosaic_0001>

<bundles_post_ra>
// kernel: tpu_custom_call.1
= control target key start
LH: loop header
LB: loop body
LE: loop exit
PB: predicated region body
PF: predicated region fallthrough
CT: control target
= control target key end

     0   :  { %7 = vsyncpa [#allocation3], 0  ;;  %s239_s0 = inlined_call_operand.hbm [shape: f32[8,32], index: 0, kind: input, shape index: {}]   ;;  %s240_s1 = inlined_call_operand.hbm [shape: f32[8,32], index: 1, kind: input, shape index: {}]   ;;  %s241_s2 = inlined_call_operand.hbm [shape: f32[1,1], index: 2, kind: output, shape index: {}]  }
   0x1   :  { %8 = vsyncpa [#allocation6], 0 }
   0x2   :  { %9 = vsyncpa [#allocation4], 0  ;;  %s181_s9 = smov [#allocation2]   ;;  %s182_s11 = smov [#allocation5]  }
   0x3   :  { %s16_s10 = sshll.u32 %s181_s9, 4  ;;  %s26_s12 = sshll.u32 %s182_s11, 4  ;;  %s17_s10 = int_to_ptr.vmem [resolvable:$true] %s16_s10  ;;  %s27_s12 = int_to_ptr.vmem [resolvable:$true] %s26_s12 }
   0x4   :  { %s109_s15 = scalar_lea.hbm %s239_s0, 128 }
   0x5   :  { %p110_p0 = scmp.ne.s32.totalorder %s239_s0, %s109_s15  ;;  %p113_p1 = scmp.lt.u32.totalorder %s109_s15, %s239_s0 }
   0x7   :  { %p115_p2 = pnand %p113_p1, %p110_p0 }
   0x9   :  { %118 = shalt.err (!%p115_p2)
}
   0xa   :  { %s119_s20 = scalar_lea.vmem %s17_s10, 128  ;;  %p124_p4 = scmp.lt.s32.totalorder %s17_s10, %s17_s10 }
   0xb   :  { %p120_p3 = scmp.ne.s32.totalorder %s17_s10, %s119_s20  ;;  %p125_p5 = scmp.lt.s32.totalorder %s119_s20, %s119_s20 }
   0xd   :  { %p126_p6 = por %p125_p5, %p124_p4 }
   0xf   :  { %p127_p7 = pnand %p126_p6, %p120_p3 }
  0x11   :  { %130 = shalt.err (!%p127_p7)
}
  0x12   :  { %19 = dma.hbm_to_vmem [thread:$0]  %s239_s0, 128, %s17_s10, [#allocation3]  }
  0x13   :  { %s131_s25 = scalar_lea.hbm %s240_s1, 128 }
  0x14   :  { %p132_p8 = scmp.ne.s32.totalorder %s240_s1, %s131_s25  ;;  %p135_p9 = scmp.lt.u32.totalorder %s131_s25, %s240_s1 }
  0x16   :  { %p137_p10 = pnand %p135_p9, %p132_p8 }
  0x18   :  { %140 = shalt.err (!%p137_p10)
}
  0x19   :  { %s141_s30 = scalar_lea.vmem %s27_s12, 128  ;;  %p146_p12 = scmp.lt.s32.totalorder %s27_s12, %s27_s12 }
  0x1a   :  { %p142_p11 = scmp.ne.s32.totalorder %s27_s12, %s141_s30  ;;  %p147_p13 = scmp.lt.s32.totalorder %s141_s30, %s141_s30 }
  0x1c   :  { %p148_p0 = por %p147_p13, %p146_p12 }
  0x1e   :  { %p149_p1 = pnand %p148_p0, %p142_p11 }
  0x20   :  { %152 = shalt.err (!%p149_p1)
}
  0x21   :  { %29 = dma.hbm_to_vmem [thread:$0]  %s240_s1, 128, %s27_s12, [#allocation6]  }
  0x22   :  { %175 = dma.done.wait [#allocation3], 128  }
  0x23   :  { %176 = vsyncadd [#allocation3], 4294967168 }
  0x24   :  { %177 = dma.done.wait [#allocation6], 128  }
  0x25   :  { %178 = vsyncadd [#allocation6], 4294967168  ;;  %v42_v0 = vld [vmem:[#allocation2] sm:$0xff]  ;;  %v43_v1 = vld [vmem:[#allocation5] sm:$0xff]  ;;  %vm60_vm0 = vcmask 261120   ;;  %vm40_vm1 = vcmask 0  }
  0x26   :  { %v44_v2 = vadd.f32 %v43_v1, %v42_v0  ;;  %103 = vlog2.f32 %v42_v0  ;;  %v183_v18 = vmov 0.0   ;;  %s184_s4 = smov [#allocation7]  }
  0x27   :  { %105 = vlog2.f32 %v43_v1  ;;  %41 = vst.msk [vmem:[#allocation7] sm:$0x1] %vm40_vm1, %v183_v18  ;;  %s87_s5 = sshll.u32 %s184_s4, 4  ;;  %s88_s5 = int_to_ptr.vmem [resolvable:$true] %s87_s5 }
  0x28   :  { %v45_v3 = vmul.f32 0.5, %v44_v2  ;;  %s153_s6 = scalar_lea.vmem %s88_s5, 16  ;;  %s157_s7 = scalar_lea.vmem %s88_s5, 32 }
  0x29   :  { %p154_p2 = scmp.ne.s32.totalorder %s88_s5, %s153_s6  ;;  %p158_p3 = scmp.lt.s32.totalorder %s88_s5, %s88_s5 }
  0x2a   :  { %107 = vlog2.f32 %v45_v3  ;;  %p159_p4 = scmp.lt.s32.totalorder %s157_s7, %s153_s6 }
  0x2c   :  { %p160_p5 = por %p159_p4, %p158_p3 }
  0x2e   :  { %v59_v26 = vld [vmem:[#allocation7] sm:$0x1]  ;;  %p161_p6 = pnand %p160_p5, %p154_p2 }
  0x30   :  { %v104_v4 = vpop.eup %103 }
  0x31   :  { %v106_v5 = vpop.eup %105  ;;  %v50_v8 = vmul.f32 0.6931472, %v104_v4 }
  0x32   :  { %v54_v9 = vmul.f32 0.6931472, %v106_v5 }
  0x34   :  { %v108_v6 = vpop.eup %107 }
  0x35   :  { %v47_v7 = vmul.f32 0.6931472, %v108_v6 }
  0x37   :  { %v48_v10 = vmax.f32 %v47_v7, 1e-07 }
  0x39   :  { %v51_v11 = vsub.f32 %v50_v8, %v48_v10  ;;  %v55_v12 = vsub.f32 %v54_v9, %v48_v10 }
  0x3b   :  { %v52_v13 = vmul.f32 %v51_v11, %v42_v0  ;;  %v56_v14 = vmul.f32 %v55_v12, %v43_v1 }
  0x3d   :  { %v57_v15 = vadd.f32 %v56_v14, %v52_v13 }
  0x3f   :  { %v58_v16 = vmul.f32 0.5, %v57_v15 }
  0x41   :  { %v61_v17 = vsel %vm60_vm0, %v58_v16, 0.0 }
  0x42   :  { %62 = vadd.xlane.f32.xlu0 %v61_v17 }
  0xcf   :  { %v63_v19 = vpop.xlane.xlu0 %62 }
  0xd0   :  { %v64_v20 = vrot.slane %v63_v19, 4 }
  0xd2   :  { %v65_v21 = vadd.f32 %v64_v20, %v63_v19 }
  0xd4   :  { %v66_v22 = vrot.slane %v65_v21, 2 }
  0xd6   :  { %v67_v23 = vadd.f32 %v66_v22, %v65_v21 }
  0xd8   :  { %v68_v24 = vrot.slane %v67_v23, 1 }
  0xda   :  { %v69_v25 = vadd.f32 %v68_v24, %v67_v23 }
  0xdc   :  { %97 = vpush %v69_v25 }
 0x10d   :  { %s98_s1 = spop %97 }
 0x10e   :  { %v71_v27 = vstv %s98_s1 }
 0x10f   :  { %v72_v28 = vadd.f32 %v71_v27, %v59_v26 }
 0x111   :  { %74 = vst.msk [vmem:[#allocation7] sm:$0x1] %vm40_vm1, %v72_v28 }
 0x118   :  { %v78_v29 = vld [vmem:[#allocation7] sm:$0x1] }
 0x119   :  { %v79_v30 = vmul.f32 0.125, %v78_v29 }
 0x11b   :  { %80 = vst.msk [vmem:[#allocation7] sm:$0x1] %vm40_vm1, %v79_v30 }
 0x11c   :  { %164 = shalt.err (!%p161_p6)
}
 0x11d   :  { %s165_s10 = scalar_lea.hbm %s241_s2, 16 }
 0x11e   :  { %p166_p7 = scmp.ne.s32.totalorder %s241_s2, %s165_s10  ;;  %p169_p8 = scmp.lt.u32.totalorder %s165_s10, %s241_s2 }
 0x120   :  { %p171_p9 = pnand %p169_p8, %p166_p7 }
 0x122   :  { %174 = shalt.err (!%p171_p9)
}
 0x123   :  { %90 = dma.vmem_to_hbm [thread:$0]  %s88_s5, 16, %s241_s2, [#allocation4]  }
 0x124   :  { %179 = dma.done.wait [#allocation4], 16  }
 0x125   :  { %180 = vsyncadd [#allocation4], 4294967280 }
 0x126   :  { %94 = vsyncpa [#allocation3], 1 }
 0x127   :  { %95 = vsyncpa [#allocation6], 1 }
 0x128   :  { %96 = vsyncpa [#allocation4], 1 }

</bundles_post_ra>
